<compile_context>
chip_gen: v7x
topology: tpu7x:2x2x1
jax: 0.10.0
libtpu: 0.0.40
codegen_flags: <defaults>
</compile_context>

<pallas_src>
import jax
import jax.numpy as jnp
from jax.experimental import pallas as pl
from jax.experimental.pallas import tpu as pltpu

F32 = jnp.float32
BF16 = jnp.bfloat16
VMEM_SPEC = pl.BlockSpec(memory_space=pltpu.MemorySpace.VMEM)

LANE = 128
EDGE_CHUNK = 1024   # bounds the in-kernel (chunk, N) one-hot footprint


# --------------------------------------------------------------------------
# Fused whole-forward kernel factory
# --------------------------------------------------------------------------
def make_gine_forward_kernel(num_layers, n_nodes, n_edges, e_chunk):
    n_chunks = -(-n_edges // e_chunk)          # ceil div (static)

    def kernel(src_ref, tgt_ref, x_ref, ea_ref, *refs):
        # refs = [per layer: we, be, w1, b1, w2, b2, gamma, beta] * num_layers
        #        + [head_w, head_b, out_ref]
        out_ref = refs[-1]
        head_w_ref = refs[-3]
        head_b_ref = refs[-2]

        h = x_ref[...]                                           # (N, d0) f32
        for layer in range(num_layers):
            (we_ref, be_ref, w1_ref, b1_ref,
             w2_ref, b2_ref, g_ref, bta_ref) = refs[layer * 8:(layer + 1) * 8]
            d_in = h.shape[1]
            h_bf = h.astype(BF16)

            # ---- gather + message + scatter-add, chunked over edges ------
            agg = jnp.zeros((n_nodes, d_in), F32)
            for c in range(n_chunks):
                e0 = c * e_chunk
                e1 = min(n_edges, e0 + e_chunk)
                ce = e1 - e0
                cols = jax.lax.broadcasted_iota(jnp.int32, (ce, n_nodes), 1)
                oh_src = jnp.where(src_ref[e0:e1, :] == cols,
                                   1.0, 0.0).astype(BF16)        # (ce, N)
                oh_tgt = jnp.where(tgt_ref[e0:e1, :] == cols,
                                   1.0, 0.0).astype(BF16)        # (ce, N)
                # gather source-node features: (ce, N) @ (N, d_in)
                x_src = jnp.dot(oh_src, h_bf, preferred_element_type=F32)
                # project edge attributes to node feature dim
                e_proj = jnp.dot(ea_ref[e0:e1, :], we_ref[...],
                                 preferred_element_type=F32) + be_ref[...]
                # GINE message
                msg = jnp.maximum(x_src + e_proj, 0.0).astype(BF16)
                # scatter-add: contract over the edge axis (no transpose copy)
                agg = agg + jax.lax.dot_general(
                    oh_tgt, msg,
                    dimension_numbers=(((0,), (0,)), ((), ())),
                    preferred_element_type=F32)                  # (N, d_in)

            # ---- (1 + eps) * x + agg, eps = 0; MLP Linear->ReLU->Linear ---
            z = h + agg
            h1 = jnp.maximum(
                jnp.dot(z.astype(BF16), w1_ref[...],
                        preferred_element_type=F32) + b1_ref[...], 0.0)
            h2 = (jnp.dot(h1.astype(BF16), w2_ref[...],
                          preferred_element_type=F32) + b2_ref[...])

            # ---- BatchNorm (batch statistics, single pass) + ReLU ---------
            # TODO(synk): eval-mode PyTorch BatchNorm1d would use trained
            # running_mean/running_var; batch statistics are used here.
            s1 = jnp.sum(h2, axis=0, keepdims=True)
            s2 = jnp.sum(h2 * h2, axis=0, keepdims=True)
            mean = s1 * (1.0 / n_nodes)
            var = s2 * (1.0 / n_nodes) - mean * mean             # biased var
            hn = (h2 - mean) * jax.lax.rsqrt(var + 1e-5)
            h = jnp.maximum(hn * g_ref[...] + bta_ref[...], 0.0)
            # dropout: eval mode -> identity

        # ---- final classifier head into a lane-dense (128-padded) slab ----
        out_ref[...] = (jnp.dot(h.astype(BF16), head_w_ref[...],
                                preferred_element_type=F32) + head_b_ref[...])

    return kernel


# --------------------------------------------------------------------------
# Parameter construction
# --------------------------------------------------------------------------
def init_params(key, in_channel, hidden_channel, num_layers, num_classes,
                edge_dim):
    params = {"layers": []}
    for layer in range(num_layers):
        d_in = in_channel if layer == 0 else hidden_channel
        key, k1, k2, k3 = jax.random.split(key, 4)
        scale_e = 1.0 / jnp.sqrt(edge_dim)
        scale_1 = 1.0 / jnp.sqrt(d_in)
        scale_2 = 1.0 / jnp.sqrt(hidden_channel)
        params["layers"].append({
            "we": jax.random.normal(k1, (edge_dim, d_in), F32) * scale_e,
            "be": jnp.zeros((1, d_in), F32),
            "w1": jax.random.normal(k2, (d_in, hidden_channel), F32) * scale_1,
            "b1": jnp.zeros((1, hidden_channel), F32),
            "w2": jax.random.normal(k3, (hidden_channel, hidden_channel), F32) * scale_2,
            "b2": jnp.zeros((1, hidden_channel), F32),
            "gamma": jnp.ones((1, hidden_channel), F32),
            "beta": jnp.zeros((1, hidden_channel), F32),
        })
    key, kh = jax.random.split(key)
    params["head_w"] = (jax.random.normal(kh, (hidden_channel, num_classes), F32)
                        / jnp.sqrt(hidden_channel))
    params["head_b"] = jnp.zeros((1, num_classes), F32)
    return params


# --------------------------------------------------------------------------
# Forward wrapper: one pallas_call for the whole model
# --------------------------------------------------------------------------
def gine_forward(params, x, edge_index, edge_attr, num_nodes):
    N = num_nodes
    E = int(edge_attr.shape[0])
    num_layers = len(params["layers"])
    in_c = int(x.shape[1])
    hid = int(params["layers"][-1]["w2"].shape[1])
    edge_dim = int(edge_attr.shape[1])
    n_classes = int(params["head_w"].shape[1])
    c_pad = ((n_classes + LANE - 1) // LANE) * LANE

    # Edge indices as (E, 1) int32 columns (the only per-edge graph structure
    # that enters the kernel -- no dense one-hot matrices in HBM).
    src = edge_index[0].astype(jnp.int32).reshape(E, 1)
    tgt = edge_index[1].astype(jnp.int32).reshape(E, 1)

    # Cast matmul operands (weights / edge features) to bf16 once, host-side.
    args = [src, tgt, x.astype(F32), edge_attr.astype(BF16)]
    for lp in params["layers"]:
        args += [lp["we"].astype(BF16), lp["be"].astype(F32),
                 lp["w1"].astype(BF16), lp["b1"].astype(F32),
                 lp["w2"].astype(BF16), lp["b2"].astype(F32),
                 lp["gamma"].astype(F32), lp["beta"].astype(F32)]
    head_w = jnp.zeros((hid, c_pad), BF16).at[:, :n_classes].set(
        params["head_w"].astype(BF16))
    head_b = jnp.zeros((1, c_pad), F32).at[:, :n_classes].set(
        params["head_b"].astype(F32))
    args += [head_w, head_b]

    # Advisory cost estimate for XLA scheduling around the fused kernel.
    flops = 0
    d = in_c
    for _ in range(num_layers):
        flops += 4 * E * N * d                    # one-hot gather + scatter
        flops += 2 * E * edge_dim * d             # edge projection
        flops += 2 * N * d * hid + 2 * N * hid * hid   # MLP
        d = hid
    flops += 2 * N * hid * c_pad                  # head
    bytes_accessed = sum(int(a.size) * a.dtype.itemsize for a in args)
    bytes_accessed += N * c_pad * 4
    cost = pl.CostEstimate(flops=int(flops),
                           transcendentals=int(num_layers * hid),
                           bytes_accessed=int(bytes_accessed))

    kernel = make_gine_forward_kernel(num_layers, N, E, min(EDGE_CHUNK, E))

    out_pad = pl.pallas_call(
        kernel,
        out_shape=jax.ShapeDtypeStruct((N, c_pad), F32),
        in_specs=[VMEM_SPEC] * len(args),
        out_specs=VMEM_SPEC,
        compiler_params=pltpu.CompilerParams(
            vmem_limit_bytes=32 * 1024 * 1024),
        cost_estimate=cost,
    )(*args)

    # TODO(synk): LLM4Graph's GIN may apply global pooling for graph-level
    # tasks; node-level logits are returned here.
    return out_pad[:, :n_classes]


if __name__ == "__main__":
    # Small deterministic problem: GINE(in_channel=16, hidden_channel=32,
    # num_layers=2, num_classes=4, dropout=0.5, norm='batchNorm')
    N, E = 32, 64
    IN_C, HID, N_LAYERS, N_CLS, EDGE_DIM = 16, 32, 2, 4, 8

    key = jax.random.PRNGKey(0)
    key, kx, ke, ki = jax.random.split(key, 4)

    x = jax.random.normal(kx, (N, IN_C), F32)
    edge_attr = jax.random.normal(ke, (E, EDGE_DIM), F32)
    edge_index = jax.random.randint(ki, (2, E), 0, N, dtype=jnp.int32)

    params = init_params(key, IN_C, HID, N_LAYERS, N_CLS, EDGE_DIM)

    out = gine_forward(params, x, edge_index, edge_attr, N)
    jax.block_until_ready(out)
    assert out.shape == (N, N_CLS)
    print("KERNEL_OK")
</pallas_src>

<mosaic_0001>
module attributes {stable_mosaic.version = 11 : i64} {
  func.func @kernel(%arg0: memref<64x1xi32, #tpu.memory_space<vmem>>, %arg1: memref<64x1xi32, #tpu.memory_space<vmem>>, %arg2: memref<32x16xf32, #tpu.memory_space<vmem>>, %arg3: memref<64x8xbf16, #tpu.memory_space<vmem>>, %arg4: memref<8x16xbf16, #tpu.memory_space<vmem>>, %arg5: memref<1x16xf32, #tpu.memory_space<vmem>>, %arg6: memref<16x32xbf16, #tpu.memory_space<vmem>>, %arg7: memref<1x32xf32, #tpu.memory_space<vmem>>, %arg8: memref<32x32xbf16, #tpu.memory_space<vmem>>, %arg9: memref<1x32xf32, #tpu.memory_space<vmem>>, %arg10: memref<1x32xf32, #tpu.memory_space<vmem>>, %arg11: memref<1x32xf32, #tpu.memory_space<vmem>>, %arg12: memref<8x32xbf16, #tpu.memory_space<vmem>>, %arg13: memref<1x32xf32, #tpu.memory_space<vmem>>, %arg14: memref<32x32xbf16, #tpu.memory_space<vmem>>, %arg15: memref<1x32xf32, #tpu.memory_space<vmem>>, %arg16: memref<32x32xbf16, #tpu.memory_space<vmem>>, %arg17: memref<1x32xf32, #tpu.memory_space<vmem>>, %arg18: memref<1x32xf32, #tpu.memory_space<vmem>>, %arg19: memref<1x32xf32, #tpu.memory_space<vmem>>, %arg20: memref<32x128xbf16, #tpu.memory_space<vmem>>, %arg21: memref<1x128xf32, #tpu.memory_space<vmem>>, %arg22: memref<32x128xf32, #tpu.memory_space<vmem>>) attributes {dimension_semantics = [], scalar_prefetch = 0 : i64, scratch_operands = 0 : i64, tpu.core_type = #tpu.core_type<tc>} {
    %c0 = arith.constant 0 : index
    %c0_0 = arith.constant 0 : index
    %0 = vector.load %arg2[%c0, %c0_0] : memref<32x16xf32, #tpu.memory_space<vmem>>, vector<32x16xf32>
    %1 = arith.truncf %0 : vector<32x16xf32> to vector<32x16xbf16>
    %cst = arith.constant 0.000000e+00 : f32
    %2 = vector.broadcast %cst : f32 to vector<32x16xf32>
    %3 = tpu.iota {dimensions = array<i32: 1>} : vector<64x32xi32>
    %c0_1 = arith.constant 0 : index
    %c0_2 = arith.constant 0 : index
    %4 = vector.load %arg0[%c0_1, %c0_2] : memref<64x1xi32, #tpu.memory_space<vmem>>, vector<64x1xi32>
    %5 = vector.broadcast %4 : vector<64x1xi32> to vector<64x32xi32>
    %6 = arith.cmpi eq, %5, %3 : vector<64x32xi32>
    %cst_3 = arith.constant 1.000000e+00 : f32
    %cst_4 = arith.constant 0.000000e+00 : f32
    %7 = vector.broadcast %cst_3 : f32 to vector<64x32xf32>
    %8 = vector.broadcast %cst_4 : f32 to vector<64x32xf32>
    %9 = arith.select %6, %7, %8 : vector<64x32xi1>, vector<64x32xf32>
    %10 = arith.truncf %9 : vector<64x32xf32> to vector<64x32xbf16>
    %c0_5 = arith.constant 0 : index
    %c0_6 = arith.constant 0 : index
    %11 = vector.load %arg1[%c0_5, %c0_6] : memref<64x1xi32, #tpu.memory_space<vmem>>, vector<64x1xi32>
    %12 = vector.broadcast %11 : vector<64x1xi32> to vector<64x32xi32>
    %13 = arith.cmpi eq, %12, %3 : vector<64x32xi32>
    %cst_7 = arith.constant 1.000000e+00 : f32
    %cst_8 = arith.constant 0.000000e+00 : f32
    %14 = vector.broadcast %cst_7 : f32 to vector<64x32xf32>
    %15 = vector.broadcast %cst_8 : f32 to vector<64x32xf32>
    %16 = arith.select %13, %14, %15 : vector<64x32xi1>, vector<64x32xf32>
    %17 = arith.truncf %16 : vector<64x32xf32> to vector<64x32xbf16>
    %cst_9 = arith.constant dense<0.000000e+00> : vector<64x16xf32>
    %18 = tpu.matmul %10, %1, %cst_9 {dimension_numbers = #tpu.dot_dimension_numbers<[1], [0], [0], [1], [0, 0, 1, 1], [], []>} : vector<64x32xbf16>, vector<32x16xbf16>, vector<64x16xf32> -> vector<64x16xf32>
    %c0_10 = arith.constant 0 : index
    %c0_11 = arith.constant 0 : index
    %19 = vector.load %arg3[%c0_10, %c0_11] : memref<64x8xbf16, #tpu.memory_space<vmem>>, vector<64x8xbf16>
    %c0_12 = arith.constant 0 : index
    %c0_13 = arith.constant 0 : index
    %20 = vector.load %arg4[%c0_12, %c0_13] : memref<8x16xbf16, #tpu.memory_space<vmem>>, vector<8x16xbf16>
    %cst_14 = arith.constant dense<0.000000e+00> : vector<64x16xf32>
    %21 = tpu.matmul %19, %20, %cst_14 {dimension_numbers = #tpu.dot_dimension_numbers<[1], [0], [0], [1], [0, 0, 1, 1], [], []>} : vector<64x8xbf16>, vector<8x16xbf16>, vector<64x16xf32> -> vector<64x16xf32>
    %c0_15 = arith.constant 0 : index
    %c0_16 = arith.constant 0 : index
    %22 = vector.load %arg5[%c0_15, %c0_16] : memref<1x16xf32, #tpu.memory_space<vmem>>, vector<1x16xf32>
    %23 = vector.broadcast %22 : vector<1x16xf32> to vector<64x16xf32>
    %24 = arith.addf %21, %23 : vector<64x16xf32>
    %25 = arith.addf %18, %24 : vector<64x16xf32>
    %cst_17 = arith.constant 0.000000e+00 : f32
    %26 = vector.broadcast %cst_17 : f32 to vector<64x16xf32>
    %27 = arith.maximumf %25, %26 : vector<64x16xf32>
    %28 = arith.truncf %27 : vector<64x16xf32> to vector<64x16xbf16>
    %cst_18 = arith.constant dense<0.000000e+00> : vector<32x16xf32>
    %29 = tpu.matmul %17, %28, %cst_18 {dimension_numbers = #tpu.dot_dimension_numbers<[0], [0], [1], [1], [0, 1, 1, 1], [], []>} : vector<64x32xbf16>, vector<64x16xbf16>, vector<32x16xf32> -> vector<32x16xf32>
    %30 = arith.addf %2, %29 : vector<32x16xf32>
    %31 = arith.addf %0, %30 : vector<32x16xf32>
    %32 = arith.truncf %31 : vector<32x16xf32> to vector<32x16xbf16>
    %c0_19 = arith.constant 0 : index
    %c0_20 = arith.constant 0 : index
    %33 = vector.load %arg6[%c0_19, %c0_20] : memref<16x32xbf16, #tpu.memory_space<vmem>>, vector<16x32xbf16>
    %cst_21 = arith.constant dense<0.000000e+00> : vector<32x32xf32>
    %34 = tpu.matmul %32, %33, %cst_21 {dimension_numbers = #tpu.dot_dimension_numbers<[1], [0], [0], [1], [0, 0, 1, 1], [], []>} : vector<32x16xbf16>, vector<16x32xbf16>, vector<32x32xf32> -> vector<32x32xf32>
    %c0_22 = arith.constant 0 : index
    %c0_23 = arith.constant 0 : index
    %35 = vector.load %arg7[%c0_22, %c0_23] : memref<1x32xf32, #tpu.memory_space<vmem>>, vector<1x32xf32>
    %36 = vector.broadcast %35 : vector<1x32xf32> to vector<32x32xf32>
    %37 = arith.addf %34, %36 : vector<32x32xf32>
    %cst_24 = arith.constant 0.000000e+00 : f32
    %38 = vector.broadcast %cst_24 : f32 to vector<32x32xf32>
    %39 = arith.maximumf %37, %38 : vector<32x32xf32>
    %40 = arith.truncf %39 : vector<32x32xf32> to vector<32x32xbf16>
    %c0_25 = arith.constant 0 : index
    %c0_26 = arith.constant 0 : index
    %41 = vector.load %arg8[%c0_25, %c0_26] : memref<32x32xbf16, #tpu.memory_space<vmem>>, vector<32x32xbf16>
    %cst_27 = arith.constant dense<0.000000e+00> : vector<32x32xf32>
    %42 = tpu.matmul %40, %41, %cst_27 {dimension_numbers = #tpu.dot_dimension_numbers<[1], [0], [0], [1], [0, 0, 1, 1], [], []>} : vector<32x32xbf16>, vector<32x32xbf16>, vector<32x32xf32> -> vector<32x32xf32>
    %c0_28 = arith.constant 0 : index
    %c0_29 = arith.constant 0 : index
    %43 = vector.load %arg9[%c0_28, %c0_29] : memref<1x32xf32, #tpu.memory_space<vmem>>, vector<1x32xf32>
    %44 = vector.broadcast %43 : vector<1x32xf32> to vector<32x32xf32>
    %45 = arith.addf %42, %44 : vector<32x32xf32>
    %cst_30 = arith.constant dense<0.000000e+00> : vector<32xf32>
    %46 = vector.multi_reduction <add>, %45, %cst_30 [0] : vector<32x32xf32> to vector<32xf32>
    %47 = vector.shape_cast %46 : vector<32xf32> to vector<1x32xf32>
    %48 = arith.mulf %45, %45 : vector<32x32xf32>
    %cst_31 = arith.constant dense<0.000000e+00> : vector<32xf32>
    %49 = vector.multi_reduction <add>, %48, %cst_31 [0] : vector<32x32xf32> to vector<32xf32>
    %50 = vector.shape_cast %49 : vector<32xf32> to vector<1x32xf32>
    %cst_32 = arith.constant 3.125000e-02 : f32
    %51 = vector.broadcast %cst_32 : f32 to vector<1x32xf32>
    %52 = arith.mulf %47, %51 : vector<1x32xf32>
    %cst_33 = arith.constant 3.125000e-02 : f32
    %53 = vector.broadcast %cst_33 : f32 to vector<1x32xf32>
    %54 = arith.mulf %50, %53 : vector<1x32xf32>
    %55 = arith.mulf %52, %52 : vector<1x32xf32>
    %56 = arith.subf %54, %55 : vector<1x32xf32>
    %57 = vector.broadcast %52 : vector<1x32xf32> to vector<32x32xf32>
    %58 = arith.subf %45, %57 : vector<32x32xf32>
    %cst_34 = arith.constant 9.99999974E-6 : f32
    %59 = vector.broadcast %cst_34 : f32 to vector<1x32xf32>
    %60 = arith.addf %56, %59 : vector<1x32xf32>
    %61 = math.rsqrt %60 : vector<1x32xf32>
    %62 = vector.broadcast %61 : vector<1x32xf32> to vector<32x32xf32>
    %63 = arith.mulf %58, %62 : vector<32x32xf32>
    %c0_35 = arith.constant 0 : index
    %c0_36 = arith.constant 0 : index
    %64 = vector.load %arg10[%c0_35, %c0_36] : memref<1x32xf32, #tpu.memory_space<vmem>>, vector<1x32xf32>
    %65 = vector.broadcast %64 : vector<1x32xf32> to vector<32x32xf32>
    %66 = arith.mulf %63, %65 : vector<32x32xf32>
    %c0_37 = arith.constant 0 : index
    %c0_38 = arith.constant 0 : index
    %67 = vector.load %arg11[%c0_37, %c0_38] : memref<1x32xf32, #tpu.memory_space<vmem>>, vector<1x32xf32>
    %68 = vector.broadcast %67 : vector<1x32xf32> to vector<32x32xf32>
    %69 = arith.addf %66, %68 : vector<32x32xf32>
    %cst_39 = arith.constant 0.000000e+00 : f32
    %70 = vector.broadcast %cst_39 : f32 to vector<32x32xf32>
    %71 = arith.maximumf %69, %70 : vector<32x32xf32>
    %72 = arith.truncf %71 : vector<32x32xf32> to vector<32x32xbf16>
    %cst_40 = arith.constant 0.000000e+00 : f32
    %73 = vector.broadcast %cst_40 : f32 to vector<32x32xf32>
    %74 = tpu.iota {dimensions = array<i32: 1>} : vector<64x32xi32>
    %c0_41 = arith.constant 0 : index
    %c0_42 = arith.constant 0 : index
    %75 = vector.load %arg0[%c0_41, %c0_42] : memref<64x1xi32, #tpu.memory_space<vmem>>, vector<64x1xi32>
    %76 = vector.broadcast %75 : vector<64x1xi32> to vector<64x32xi32>
    %77 = arith.cmpi eq, %76, %74 : vector<64x32xi32>
    %cst_43 = arith.constant 1.000000e+00 : f32
    %cst_44 = arith.constant 0.000000e+00 : f32
    %78 = vector.broadcast %cst_43 : f32 to vector<64x32xf32>
    %79 = vector.broadcast %cst_44 : f32 to vector<64x32xf32>
    %80 = arith.select %77, %78, %79 : vector<64x32xi1>, vector<64x32xf32>
    %81 = arith.truncf %80 : vector<64x32xf32> to vector<64x32xbf16>
    %c0_45 = arith.constant 0 : index
    %c0_46 = arith.constant 0 : index
    %82 = vector.load %arg1[%c0_45, %c0_46] : memref<64x1xi32, #tpu.memory_space<vmem>>, vector<64x1xi32>
    %83 = vector.broadcast %82 : vector<64x1xi32> to vector<64x32xi32>
    %84 = arith.cmpi eq, %83, %74 : vector<64x32xi32>
    %cst_47 = arith.constant 1.000000e+00 : f32
    %cst_48 = arith.constant 0.000000e+00 : f32
    %85 = vector.broadcast %cst_47 : f32 to vector<64x32xf32>
    %86 = vector.broadcast %cst_48 : f32 to vector<64x32xf32>
    %87 = arith.select %84, %85, %86 : vector<64x32xi1>, vector<64x32xf32>
    %88 = arith.truncf %87 : vector<64x32xf32> to vector<64x32xbf16>
    %cst_49 = arith.constant dense<0.000000e+00> : vector<64x32xf32>
    %89 = tpu.matmul %81, %72, %cst_49 {dimension_numbers = #tpu.dot_dimension_numbers<[1], [0], [0], [1], [0, 0, 1, 1], [], []>} : vector<64x32xbf16>, vector<32x32xbf16>, vector<64x32xf32> -> vector<64x32xf32>
    %c0_50 = arith.constant 0 : index
    %c0_51 = arith.constant 0 : index
    %90 = vector.load %arg3[%c0_50, %c0_51] : memref<64x8xbf16, #tpu.memory_space<vmem>>, vector<64x8xbf16>
    %c0_52 = arith.constant 0 : index
    %c0_53 = arith.constant 0 : index
    %91 = vector.load %arg12[%c0_52, %c0_53] : memref<8x32xbf16, #tpu.memory_space<vmem>>, vector<8x32xbf16>
    %cst_54 = arith.constant dense<0.000000e+00> : vector<64x32xf32>
    %92 = tpu.matmul %90, %91, %cst_54 {dimension_numbers = #tpu.dot_dimension_numbers<[1], [0], [0], [1], [0, 0, 1, 1], [], []>} : vector<64x8xbf16>, vector<8x32xbf16>, vector<64x32xf32> -> vector<64x32xf32>
    %c0_55 = arith.constant 0 : index
    %c0_56 = arith.constant 0 : index
    %93 = vector.load %arg13[%c0_55, %c0_56] : memref<1x32xf32, #tpu.memory_space<vmem>>, vector<1x32xf32>
    %94 = vector.broadcast %93 : vector<1x32xf32> to vector<64x32xf32>
    %95 = arith.addf %92, %94 : vector<64x32xf32>
    %96 = arith.addf %89, %95 : vector<64x32xf32>
    %cst_57 = arith.constant 0.000000e+00 : f32
    %97 = vector.broadcast %cst_57 : f32 to vector<64x32xf32>
    %98 = arith.maximumf %96, %97 : vector<64x32xf32>
    %99 = arith.truncf %98 : vector<64x32xf32> to vector<64x32xbf16>
    %cst_58 = arith.constant dense<0.000000e+00> : vector<32x32xf32>
    %100 = tpu.matmul %88, %99, %cst_58 {dimension_numbers = #tpu.dot_dimension_numbers<[0], [0], [1], [1], [0, 1, 1, 1], [], []>} : vector<64x32xbf16>, vector<64x32xbf16>, vector<32x32xf32> -> vector<32x32xf32>
    %101 = arith.addf %73, %100 : vector<32x32xf32>
    %102 = arith.addf %71, %101 : vector<32x32xf32>
    %103 = arith.truncf %102 : vector<32x32xf32> to vector<32x32xbf16>
    %c0_59 = arith.constant 0 : index
    %c0_60 = arith.constant 0 : index
    %104 = vector.load %arg14[%c0_59, %c0_60] : memref<32x32xbf16, #tpu.memory_space<vmem>>, vector<32x32xbf16>
    %cst_61 = arith.constant dense<0.000000e+00> : vector<32x32xf32>
    %105 = tpu.matmul %103, %104, %cst_61 {dimension_numbers = #tpu.dot_dimension_numbers<[1], [0], [0], [1], [0, 0, 1, 1], [], []>} : vector<32x32xbf16>, vector<32x32xbf16>, vector<32x32xf32> -> vector<32x32xf32>
    %c0_62 = arith.constant 0 : index
    %c0_63 = arith.constant 0 : index
    %106 = vector.load %arg15[%c0_62, %c0_63] : memref<1x32xf32, #tpu.memory_space<vmem>>, vector<1x32xf32>
    %107 = vector.broadcast %106 : vector<1x32xf32> to vector<32x32xf32>
    %108 = arith.addf %105, %107 : vector<32x32xf32>
    %cst_64 = arith.constant 0.000000e+00 : f32
    %109 = vector.broadcast %cst_64 : f32 to vector<32x32xf32>
    %110 = arith.maximumf %108, %109 : vector<32x32xf32>
    %111 = arith.truncf %110 : vector<32x32xf32> to vector<32x32xbf16>
    %c0_65 = arith.constant 0 : index
    %c0_66 = arith.constant 0 : index
    %112 = vector.load %arg16[%c0_65, %c0_66] : memref<32x32xbf16, #tpu.memory_space<vmem>>, vector<32x32xbf16>
    %cst_67 = arith.constant dense<0.000000e+00> : vector<32x32xf32>
    %113 = tpu.matmul %111, %112, %cst_67 {dimension_numbers = #tpu.dot_dimension_numbers<[1], [0], [0], [1], [0, 0, 1, 1], [], []>} : vector<32x32xbf16>, vector<32x32xbf16>, vector<32x32xf32> -> vector<32x32xf32>
    %c0_68 = arith.constant 0 : index
    %c0_69 = arith.constant 0 : index
    %114 = vector.load %arg17[%c0_68, %c0_69] : memref<1x32xf32, #tpu.memory_space<vmem>>, vector<1x32xf32>
    %115 = vector.broadcast %114 : vector<1x32xf32> to vector<32x32xf32>
    %116 = arith.addf %113, %115 : vector<32x32xf32>
    %cst_70 = arith.constant dense<0.000000e+00> : vector<32xf32>
    %117 = vector.multi_reduction <add>, %116, %cst_70 [0] : vector<32x32xf32> to vector<32xf32>
    %118 = vector.shape_cast %117 : vector<32xf32> to vector<1x32xf32>
    %119 = arith.mulf %116, %116 : vector<32x32xf32>
    %cst_71 = arith.constant dense<0.000000e+00> : vector<32xf32>
    %120 = vector.multi_reduction <add>, %119, %cst_71 [0] : vector<32x32xf32> to vector<32xf32>
    %121 = vector.shape_cast %120 : vector<32xf32> to vector<1x32xf32>
    %cst_72 = arith.constant 3.125000e-02 : f32
    %122 = vector.broadcast %cst_72 : f32 to vector<1x32xf32>
    %123 = arith.mulf %118, %122 : vector<1x32xf32>
    %cst_73 = arith.constant 3.125000e-02 : f32
    %124 = vector.broadcast %cst_73 : f32 to vector<1x32xf32>
    %125 = arith.mulf %121, %124 : vector<1x32xf32>
    %126 = arith.mulf %123, %123 : vector<1x32xf32>
    %127 = arith.subf %125, %126 : vector<1x32xf32>
    %128 = vector.broadcast %123 : vector<1x32xf32> to vector<32x32xf32>
    %129 = arith.subf %116, %128 : vector<32x32xf32>
    %cst_74 = arith.constant 9.99999974E-6 : f32
    %130 = vector.broadcast %cst_74 : f32 to vector<1x32xf32>
    %131 = arith.addf %127, %130 : vector<1x32xf32>
    %132 = math.rsqrt %131 : vector<1x32xf32>
    %133 = vector.broadcast %132 : vector<1x32xf32> to vector<32x32xf32>
    %134 = arith.mulf %129, %133 : vector<32x32xf32>
    %c0_75 = arith.constant 0 : index
    %c0_76 = arith.constant 0 : index
    %135 = vector.load %arg18[%c0_75, %c0_76] : memref<1x32xf32, #tpu.memory_space<vmem>>, vector<1x32xf32>
    %136 = vector.broadcast %135 : vector<1x32xf32> to vector<32x32xf32>
    %137 = arith.mulf %134, %136 : vector<32x32xf32>
    %c0_77 = arith.constant 0 : index
    %c0_78 = arith.constant 0 : index
    %138 = vector.load %arg19[%c0_77, %c0_78] : memref<1x32xf32, #tpu.memory_space<vmem>>, vector<1x32xf32>
    %139 = vector.broadcast %138 : vector<1x32xf32> to vector<32x32xf32>
    %140 = arith.addf %137, %139 : vector<32x32xf32>
    %cst_79 = arith.constant 0.000000e+00 : f32
    %141 = vector.broadcast %cst_79 : f32 to vector<32x32xf32>
    %142 = arith.maximumf %140, %141 : vector<32x32xf32>
    %143 = arith.truncf %142 : vector<32x32xf32> to vector<32x32xbf16>
    %c0_80 = arith.constant 0 : index
    %c0_81 = arith.constant 0 : index
    %144 = vector.load %arg20[%c0_80, %c0_81] : memref<32x128xbf16, #tpu.memory_space<vmem>>, vector<32x128xbf16>
    %cst_82 = arith.constant dense<0.000000e+00> : vector<32x128xf32>
    %145 = tpu.matmul %143, %144, %cst_82 {dimension_numbers = #tpu.dot_dimension_numbers<[1], [0], [0], [1], [0, 0, 1, 1], [], []>} : vector<32x32xbf16>, vector<32x128xbf16>, vector<32x128xf32> -> vector<32x128xf32>
    %c0_83 = arith.constant 0 : index
    %c0_84 = arith.constant 0 : index
    %146 = vector.load %arg21[%c0_83, %c0_84] : memref<1x128xf32, #tpu.memory_space<vmem>>, vector<1x128xf32>
    %147 = vector.broadcast %146 : vector<1x128xf32> to vector<32x128xf32>
    %148 = arith.addf %145, %147 : vector<32x128xf32>
    %c0_85 = arith.constant 0 : index
    %c0_86 = arith.constant 0 : index
    %149 = vector.load %arg22[%c0_85, %c0_86] : memref<32x128xf32, #tpu.memory_space<vmem>>, vector<32x128xf32>
    tpu.vector_store %arg22[%c0_85, %c0_86], %148 {strides = array<i32>} : memref<32x128xf32, #tpu.memory_space<vmem>>, vector<32x128xf32>,
    return
  }
}

</mosaic_0001>

<bundles_post_ra>
// kernel: tpu_custom_call.1
= control target key start
LH: loop header
LB: loop body
LE: loop exit
PB: predicated region body
PF: predicated region fallthrough
CT: control target
= control target key end

     0   :  { %s1941_s0 = inlined_call_operand.vmem [shape: s32[64,1], index: 0, kind: input, shape index: {}]   ;;  %s1942_s1 = inlined_call_operand.vmem [shape: s32[64,1], index: 1, kind: input, shape index: {}]   ;;  %s1943_s2 = inlined_call_operand.vmem [shape: f32[32,16], index: 2, kind: input, shape index: {}]   ;;  %s1944_s3 = inlined_call_operand.vmem [shape: bf16[64,8], index: 3, kind: input, shape index: {}]   ;;  %s1945_s4 = inlined_call_operand.vmem [shape: bf16[8,16], index: 4, kind: input, shape index: {}]   ;;  %s1946_s5 = inlined_call_operand.vmem [shape: f32[1,16], index: 5, kind: input, shape index: {}]   ;;  %s1947_s6 = inlined_call_operand.vmem [shape: bf16[16,32], index: 6, kind: input, shape index: {}]   ;;  %s1948_s7 = inlined_call_operand.vmem [shape: f32[1,32], index: 7, kind: input, shape index: {}]   ;;  %s1949_s8 = inlined_call_operand.vmem [shape: bf16[32,32], index: 8, kind: input, shape index: {}]   ;;  %s1950_s9 = inlined_call_operand.vmem [shape: f32[1,32], index: 9, kind: input, shape index: {}]   ;;  %s1951_s10 = inlined_call_operand.vmem [shape: f32[1,32], index: 10, kind: input, shape index: {}]   ;;  %s1952_s11 = inlined_call_operand.vmem [shape: f32[1,32], index: 11, kind: input, shape index: {}]   ;;  %s1953_s12 = inlined_call_operand.vmem [shape: bf16[8,32], index: 12, kind: input, shape index: {}]   ;;  %s1954_s13 = inlined_call_operand.vmem [shape: f32[1,32], index: 13, kind: input, shape index: {}]   ;;  %s1955_s14 = inlined_call_operand.vmem [shape: bf16[32,32], index: 14, kind: input, shape index: {}]   ;;  %s1956_s15 = inlined_call_operand.vmem [shape: f32[1,32], index: 15, kind: input, shape index: {}]   ;;  %s1957_s16 = inlined_call_operand.vmem [shape: bf16[32,32], index: 16, kind: input, shape index: {}]   ;;  %s1958_s17 = inlined_call_operand.vmem [shape: f32[1,32], index: 17, kind: input, shape index: {}]   ;;  %s1959_s18 = inlined_call_operand.vmem [shape: f32[1,32], index: 18, kind: input, shape index: {}]   ;;  %s1960_s19 = inlined_call_operand.vmem [shape: f32[1,32], index: 19, kind: input, shape index: {}]   ;;  %s1961_s20 = inlined_call_operand.vmem [shape: bf16[32,128], index: 20, kind: input, shape index: {}]   ;;  %s1962_s21 = inlined_call_operand.vmem [shape: f32[1,128], index: 21, kind: input, shape index: {}]   ;;  %s1963_s22 = inlined_call_operand.hbm [shape: f32[32,128], index: 22, kind: output, shape index: {}]  }
   0x1   :  { %1968 = sst [smem:[#allocation5_spill]] %s1941_s0 }
   0x2   :  { %1969 = sst [smem:[#allocation6_spill]] %s1942_s1 }
   0x3   :  { %1970 = sst [smem:[#allocation7_spill]] %s1943_s2 }
   0x4   :  { %1971 = sst [smem:[#allocation8_spill]] %s1944_s3 }
   0x5   :  { %1972 = sst [smem:[#allocation9_spill]] %s1945_s4 }
   0x6   :  { %1973 = sst [smem:[#allocation10_spill]] %s1946_s5 }
   0x7   :  { %1974 = sst [smem:[#allocation11_spill]] %s1947_s6 }
   0x8   :  { %s1975_s29 = sld [smem:[#allocation5_spill]]  ;;  %v1533_v2 = vmov 0   ;;  %vm234_vm0 = vcmask 1043456   ;;  %s1976_s3 = sld [smem:[#allocation9_spill]]  ;;  %vm221_vm1 = vcmask 64512  }
   0x9   :  { %1491 = vset.pattern.permute.xlu1 %v1533_v2  ;;  %1490 = vset.pattern.permute.xlu0 %v1533_v2  ;;  %s1977_s4 = sld [smem:[#allocation8_spill]]  ;;  %s1979_s6 = sld [smem:[#allocation6_spill]] }
   0xe   :  { %v83_v0 = vld [vmem:[%s1975_s29 + $0x10] sm:$0xff]  ;;  %v81_v1 = vld [vmem:[%s1975_s29] sm:$0xff]  ;;  %v84_v3 = vld [vmem:[%s1975_s29 + $0x18] sm:$0xff] }
   0xf   :  { %96 = vperm.xlu1 %1491, %v83_v0   ;;  %90 = vperm.xlu0 %1490, %v81_v1   ;;  %v82_v4 = vld [vmem:[%s1975_s29 + $0x8] sm:$0xff]  ;;  %v85_v6 = vld [vmem:[%s1975_s29 + $0x20] sm:$0xff]  ;;  %v1691_v11 = vld [vmem:[%s1977_s4 + $0x10] sm:$0xff]  }
  0x10   :  { %v86_v5 = vld [vmem:[%s1975_s29 + $0x28] sm:$0xff]  ;;  %v193_v7 = vld [vmem:[%s1976_s3] sm:$0xf]  ;;  %v88_v12 = vld [vmem:[%s1975_s29 + $0x38] sm:$0xff]  ;;  %s1978_s3 = sld [smem:[#allocation7_spill]] }
  0x11   :  { %v236_v8 = vsel %vm234_vm0, %v193_v7, 0  ;;  %v1678_v9 = vld [vmem:[%s1977_s4] sm:$0xff]   ;;  %1483 = vmatprep.subr.msk.bf16.mxu0 %vm234_vm0, %v193_v7  ;;  %v1684_v10 = vld [vmem:[%s1977_s4 + $0x8] sm:$0xff]   ;;  %v87_v13 = vld [vmem:[%s1975_s29 + $0x30] sm:$0xff] }
  0x12   :  { %1346 = vmatpush3.bf16.msra.mxu0 %v236_v8  ;;  %1347 = vmatprep.mubr.msk.bf16.mxu0 %vm221_vm1, %v1678_v9  ;;  %v134_v20 = vld [vmem:[%s1979_s6 + $0x8] sm:$0xff]  ;;  %v133_v21 = vld [vmem:[%s1979_s6] sm:$0xff]  ;;  %v1736_v22 = vld [vmem:[%s1977_s4 + $0x18] sm:$0xff]  }
  0x13   :  { %99 = vperm.xlu1 %1491, %v84_v3   ;;  %93 = vperm.xlu0 %1490, %v82_v4  }
  0x15   :  { %1348 = vmatmul.mubr.msk.bf16.vlgmr.msra.gmra.mrb[0].mxu0 %vm221_vm1, %v1684_v10 }
  0x16   :  { %v1702_v14 = vld [vmem:[%s1978_s3] sm:$0xff]  ;;  %v1707_v15 = vld [vmem:[%s1978_s3 + $0x8] sm:$0xff]  ;;  %v1712_v16 = vld [vmem:[%s1978_s3 + $0x10] sm:$0xff]  ;;  %1351 = vmatprep.mubr.msk.bf16.mxu0 %vm221_vm1, %v1691_v11 }
  0x17   :  { %105 = vperm.xlu1 %1491, %v86_v5   ;;  %102 = vperm.xlu0 %1490, %v85_v6   ;;  %v1717_v17 = vld [vmem:[%s1978_s3 + $0x18] sm:$0xff]  ;;  %v77_v18 = vpack.c.bf16 %v1707_v15, %v1702_v14 }
  0x18   :  { %v78_v19 = vpack.c.bf16 %v1717_v17, %v1712_v16 }
  0x19   :  { %1355 = vmatprep.subr.bf16.mxu0 %v77_v18 }
  0x1a   :  { %1356 = vmatpush3.bf16.msra.mxu0 %v77_v18 }
  0x1b   :  { %111 = vperm.xlu1 %1491, %v88_v12   ;;  %108 = vperm.xlu0 %1490, %v87_v13  }
  0x1c   :  { %1357 = vmatprep.subr.bf16.mxu0 %v78_v19 }
  0x1d   :  { %27 = vsyncpa [#allocation3], 0  ;;  %v136_v23 = vld [vmem:[%s1979_s6 + $0x18] sm:$0xff]  ;;  %v135_v24 = vld [vmem:[%s1979_s6 + $0x10] sm:$0xff]  ;;  %1352 = vmatmul.mubr.msk.bf16.gmra.mrb[4].mxu0 %vm221_vm1, %v1736_v22  ;;  %v79_v31 = vlaneseq  ;;  %vm303_vm6 = vcmask 261120   ;;  %v1534_v37 = vmov 0.0  }
  0x1e   :  { %1358 = vmatpush3.bf16.msra.mxu0 %v78_v19  ;;  %v698_v25 = vld [vmem:[%s1953_s12] sm:$0xf]  ;;  %v138_v26 = vld [vmem:[%s1979_s6 + $0x28] sm:$0xff]  ;;  %v140_v29 = vld [vmem:[%s1979_s6 + $0x38] sm:$0xff]  ;;  %s1980_s3 = sld [smem:[#allocation10_spill]]  ;;  %s1981_s0 = sld [smem:[#allocation11_spill]] }
  0x1f   :  { %145 = vperm.xlu1 %1491, %v134_v20   ;;  %142 = vperm.xlu0 %1490, %v133_v21   ;;  %v137_v27 = vld [vmem:[%s1979_s6 + $0x20] sm:$0xff]  ;;  %v707_v28 = vsel %vm234_vm0, %v698_v25, 0  ;;  %v139_v30 = vld [vmem:[%s1979_s6 + $0x30] sm:$0xff]  ;;  %v1763_v32 = vand.u32 127, %v79_v31 }
  0x20   :  { %1484 = vmatprep.subr.msk.bf16.mxu0 %vm234_vm0, %v698_v25 }
  0x23   :  { %151 = vperm.xlu1 %1491, %v136_v23   ;;  %148 = vperm.xlu0 %1490, %v135_v24  }
  0x27   :  { %157 = vperm.xlu1 %1491, %v138_v26   ;;  %154 = vperm.xlu0 %1490, %v137_v27  }
  0x2b   :  { %163 = vperm.xlu1 %1491, %v140_v29   ;;  %160 = vperm.xlu0 %1490, %v139_v30  }
  0x8e   :  { %v97_v33 = vpop.permute.xlu1 %96  ;;  %v91_v34 = vpop.permute.xlu0 %90 }
  0x8f   :  { %vm115_vm2 = vcmp.eq.s32.totalorder %v97_v33, %v1763_v32  ;;  %vm113_vm3 = vcmp.eq.s32.totalorder %v91_v34, %v1763_v32 }
  0x90   :  { %v123_v38 = vsel %vm115_vm2, 1.0, %v1534_v37  ;;  %v121_v39 = vsel %vm113_vm3, 1.0, %v1534_v37 }
  0x92   :  { %v100_v35 = vpop.permute.xlu1 %99  ;;  %v94_v36 = vpop.permute.xlu0 %93 }
  0x93   :  { %vm116_vm4 = vcmp.eq.s32.totalorder %v100_v35, %v1763_v32  ;;  %vm114_vm5 = vcmp.eq.s32.totalorder %v94_v36, %v1763_v32 }
  0x94   :  { %v124_v40 = vsel %vm116_vm4, 1.0, %v1534_v37  ;;  %v122_v41 = vsel %vm114_vm5, 1.0, %v1534_v37  ;;  %vm409_vm4 = vcmask 523264  }
  0x95   :  { %v1769_v42 = vpack.c.bf16 %v124_v40, %v123_v38  ;;  %v129_v43 = vpack.c.bf16 %v122_v41, %v121_v39 }
  0x96   :  { %v106_v44 = vpop.permute.xlu1 %105  ;;  %v103_v45 = vpop.permute.xlu0 %102 }
  0x97   :  { %vm118_vm7 = vcmp.eq.s32.totalorder %v106_v44, %v1763_v32  ;;  %vm117_vm8 = vcmp.eq.s32.totalorder %v103_v45, %v1763_v32  ;;  %1359 = vmatprep.mubr.msk.bf16.mxu0 %vm303_vm6, %v129_v43 }
  0x98   :  { %v126_v46 = vsel %vm118_vm7, 1.0, %v1534_v37  ;;  %v125_v47 = vsel %vm117_vm8, 1.0, %v1534_v37  ;;  %1360 = vmatmul.mubr.msk.bf16.vlgmr.msra.gmra.mrb[0].mxu0 %vm303_vm6, %v1769_v42 }
  0x99   :  { %v1776_v48 = vpack.c.bf16 %v126_v46, %v125_v47  ;;  %1394 = vmatpush3.bf16.msra.mxu0 %v707_v28  ;;  %v1496_v46 = vld [vmem:[%s1981_s0] sm:$0xff]  }
  0x9a   :  { %v112_v49 = vpop.permute.xlu1 %111  ;;  %v109_v50 = vpop.permute.xlu0 %108 }
  0x9b   :  { %vm120_vm9 = vcmp.eq.s32.totalorder %v112_v49, %v1763_v32  ;;  %vm119_vm10 = vcmp.eq.s32.totalorder %v109_v50, %v1763_v32  ;;  %1363 = vmatprep.mubr.msk.bf16.mxu0 %vm303_vm6, %v1776_v48 }
  0x9c   :  { %v128_v51 = vsel %vm120_vm9, 1.0, %v1534_v37  ;;  %v127_v52 = vsel %vm119_vm10, 1.0, %v1534_v37 }
  0x9d   :  { %v1782_v53 = vpack.c.bf16 %v128_v51, %v127_v52 }
  0x9e   :  { %v146_v54 = vpop.permute.xlu1 %145  ;;  %v143_v55 = vpop.permute.xlu0 %142 }
  0x9f   :  { %vm166_vm11 = vcmp.eq.s32.totalorder %v146_v54, %v1763_v32  ;;  %vm165_vm12 = vcmp.eq.s32.totalorder %v143_v55, %v1763_v32 }
  0xa0   :  { %v174_v56 = vsel %vm166_vm11, 1.0, %v1534_v37  ;;  %v173_v57 = vsel %vm165_vm12, 1.0, %v1534_v37  ;;  %1364 = vmatmul.mubr.msk.bf16.gmra.mrb[4].mxu0 %vm303_vm6, %v1782_v53 }
  0xa1   :  { %v181_v58 = vpack.c.bf16 %v174_v56, %v173_v57  ;;  %1395 = vmatprep.mubr.msk.bf16.mxu0 %vm221_vm1, %v1678_v9 }
  0xa2   :  { %v152_v59 = vpop.permute.xlu1 %151  ;;  %v149_v60 = vpop.permute.xlu0 %148 }
  0xa3   :  { %vm168_vm13 = vcmp.eq.s32.totalorder %v152_v59, %v1763_v32  ;;  %vm167_vm14 = vcmp.eq.s32.totalorder %v149_v60, %v1763_v32  ;;  %393 = vxpose.xlu0.c.b16.start [1/4] (short) (narrow) %v181_v58, 32  ;;  %v1497_v59 = vld [vmem:[%s1949_s8] sm:$0xff]  }
  0xa4   :  { %v176_v61 = vsel %vm168_vm13, 1.0, %v1534_v37  ;;  %v175_v62 = vsel %vm167_vm14, 1.0, %v1534_v37 }
  0xa5   :  { %v182_v63 = vpack.c.bf16 %v176_v61, %v175_v62 }
  0xa6   :  { %v158_v0 = vpop.permute.xlu1 %157  ;;  %v155_v1 = vpop.permute.xlu0 %154 }
  0xa7   :  { %vm170_vm15 = vcmp.eq.s32.totalorder %v158_v0, %v1763_v32  ;;  %vm169_vm0 = vcmp.eq.s32.totalorder %v155_v1, %v1763_v32  ;;  %394 = vxpose.xlu0.c.b16.cont [2/4] (short) (narrow) %v182_v63, 32 }
  0xa8   :  { %v178_v2 = vsel %vm170_vm15, 1.0, %v1534_v37  ;;  %v177_v3 = vsel %vm169_vm0, 1.0, %v1534_v37  ;;  %1396 = vmatmul.mubr.msk.bf16.vlgmr.msra.gmra.mrb[8].mxu0 %vm221_vm1, %v1684_v10 }
  0xa9   :  { %v183_v4 = vpack.c.bf16 %v178_v2, %v177_v3  ;;  %1399 = vmatprep.mubr.msk.bf16.mxu0 %vm221_vm1, %v1691_v11  ;;  %v1238_v11 = vld [vmem:[%s1980_s3] ss:$0 sm:$0xff] }
  0xaa   :  { %v164_v5 = vpop.permute.xlu1 %163  ;;  %v161_v6 = vpop.permute.xlu0 %160 }
  0xab   :  { %vm172_vm2 = vcmp.eq.s32.totalorder %v164_v5, %v1763_v32  ;;  %vm171_vm3 = vcmp.eq.s32.totalorder %v161_v6, %v1763_v32  ;;  %395 = vxpose.xlu0.c.b16.cont [3/4] (short) (narrow) %v183_v4, 32 }
  0xac   :  { %v180_v7 = vsel %vm172_vm2, 1.0, %v1534_v37  ;;  %v179_v8 = vsel %vm171_vm3, 1.0, %v1534_v37 }
  0xad   :  { %v184_v9 = vpack.c.bf16 %v180_v7, %v179_v8  ;;  %v1257_v8 = vld [vmem:[%s1950_s9] ss:$0 sm:$0xff] }
  0xaf   :  { %396 = vxpose.xlu0.c.b16.end [4/4] (short) (narrow) %v184_v9, 32 }
  0xb0   :  { %1400 = vmatmul.mubr.msk.bf16.gmra.mrb[12].mxu0 %vm221_vm1, %v1736_v22  ;;  %vm486_vm1 = vcmask 130048  }
  0xb1   :  { %1407 = vmatprep.mubr.msk.bf16.mxu0 %vm303_vm6, %v129_v43 }
 0x109   :  { %v1803_v10 = vpop.trf.xlu0 }
 0x10a   :  { %1375 = vmatprep.mubr.msk.bf16.mxu1 %vm409_vm4, %v1803_v10 }
 0x10d   :  { %v1810_v45 = vpop.trf.xlu0 }
 0x16b   :  { %v1361_v12 = vpop.f32.mrb[0].mxu0 }
 0x16c   :  { %v1451_v13 = vadd.f32 %v1361_v12, %v1238_v11  ;;  %v350_v18 = vpop.f32.mrb[1].mxu0 }
 0x16d   :  { %v1452_v19 = vadd.f32 %v1238_v11, %v350_v18  ;;  %v1362_v20 = vpop.f32.mrb[2].mxu0 }
 0x16e   :  { %v1453_v21 = vadd.f32 %v1362_v20, %v1238_v11  ;;  %v353_v23 = vpop.f32.mrb[3].mxu0  ;;  %v383_v24 = vmax.f32 %v1451_v13, 0.0 }
 0x16f   :  { %v1454_v22 = vadd.f32 %v1238_v11, %v353_v23  ;;  %v381_v26 = vmax.f32 %v1452_v19, 0.0 }
 0x170   :  { %v384_v25 = vmax.f32 %v1453_v21, 0.0 }
 0x171   :  { %v382_v27 = vmax.f32 %v1454_v22, 0.0 }
 0x172   :  { %v390_v28 = vpack.c.bf16 %v384_v25, %v383_v24 }
 0x173   :  { %v1365_v29 = vpop.f32.mrb[4].mxu0  ;;  %v389_v30 = vpack.c.bf16 %v382_v27, %v381_v26 }
 0x174   :  { %v1455_v31 = vadd.f32 %v1365_v29, %v1238_v11  ;;  %v366_v32 = vpop.f32.mrb[5].mxu0 }
 0x175   :  { %v1456_v33 = vadd.f32 %v1238_v11, %v366_v32  ;;  %v1366_v34 = vpop.f32.mrb[6].mxu0  ;;  %1367 = vmatprep.subr.bf16.mxu1 %v389_v30 }
 0x176   :  { %v1457_v35 = vadd.f32 %v1366_v34, %v1238_v11  ;;  %v369_v36 = vpop.f32.mrb[7].mxu0  ;;  %1368 = vmatpush3.bf16.msra.mxu1 %v389_v30  ;;  %v387_v38 = vmax.f32 %v1455_v31, 0.0 }
 0x177   :  { %v1458_v37 = vadd.f32 %v1238_v11, %v369_v36  ;;  %1369 = vmatprep.subr.bf16.mxu1 %v390_v28  ;;  %v385_v40 = vmax.f32 %v1456_v33, 0.0 }
 0x178   :  { %v388_v39 = vmax.f32 %v1457_v35, 0.0 }
 0x179   :  { %v386_v41 = vmax.f32 %v1458_v37, 0.0 }
 0x17a   :  { %v392_v43 = vpack.c.bf16 %v388_v39, %v387_v38  ;;  %1370 = vmatpush3.bf16.msra.mxu1 %v390_v28 }
 0x17b   :  { %v391_v44 = vpack.c.bf16 %v386_v41, %v385_v40 }
 0x17d   :  { %1371 = vmatprep.subr.bf16.mxu1 %v391_v44 }
 0x17e   :  { %1372 = vmatpush3.bf16.msra.mxu1 %v391_v44 }
 0x17f   :  { %1373 = vmatprep.subr.bf16.mxu1 %v392_v43 }
 0x182   :  { %1374 = vmatpush3.bf16.msra.mxu1 %v392_v43 }
 0x183   :  { %1379 = vmatprep.subr.bf16.mxu1 %v1496_v46 }
 0x185   :  { %1376 = vmatmul.mubr.msk.bf16.vlgmr.msra.gmra.mrb[0].mxu1 %vm409_vm4, %v1810_v45 }
 0x186   :  { %1380 = vmatpush3.bf16.msra.mxu1 %v1496_v46 }
 0x187   :  { %1385 = vmatprep.subr.bf16.mxu1 %v1497_v59 }
 0x258   :  { %v1377_v47 = vpop.f32.mrb[0].mxu1 }
 0x259   :  { %v450_v49 = vpop.f32.mrb[1].mxu1  ;;  %v467_v51 = vadd.f32 %v1377_v47, %v1712_v16  ;;  %v1498_v16 = vld [vmem:[%s1949_s8 + $0x8] sm:$0xff]   ;;  %s1535_s8 = smov [#allocation2]  }
 0x25a   :  { %v1378_v50 = vpop.f32.mrb[2].mxu1  ;;  %v465_v55 = vadd.f32 %v450_v49, %v1702_v14  ;;  %v1253_v14 = vld [vmem:[%s1948_s7] ss:$0 sm:$0xff]  ;;  %s1227_s9 = sshll.u32 %s1535_s8, 4  ;;  %s1228_s9 = int_to_ptr.vmem [resolvable:$true] %s1227_s9 }
 0x25b   :  { %v468_v52 = vadd.f32 %v1378_v50, %v1717_v17  ;;  %v453_v54 = vpop.f32.mrb[3].mxu1  ;;  %s1509_s25 = scalar_lea.vmem %s1228_s9, 512  ;;  %p1514_p1 = scmp.lt.s32.totalorder %s1228_s9, %s1228_s9 }
 0x25c   :  { %v466_v56 = vadd.f32 %v453_v54, %v1707_v15  ;;  %p1510_p0 = scmp.ne.s32.totalorder %s1228_s9, %s1509_s25  ;;  %p1515_p2 = scmp.lt.s32.totalorder %s1509_s25, %s1509_s25 }
 0x25d   :  { %v470_v57 = vpack.c.bf16 %v468_v52, %v467_v51 }
 0x25e   :  { %v469_v58 = vpack.c.bf16 %v466_v56, %v465_v55  ;;  %p1516_p3 = por %p1515_p2, %p1514_p1 }
 0x260   :  { %1381 = vmatprep.mubr.msk.bf16.mxu1 %vm486_vm1, %v469_v58  ;;  %p1517_p4 = pnand %p1516_p3, %p1510_p0 }
 0x261   :  { %1382 = vmatmul.mubr.msk.bf16.vlgmr.msra.gmra.mrb[4].mxu1 %vm486_vm1, %v470_v57 }
 0x262   :  { %1386 = vmatpush3.bf16.msra.mxu1 %v1497_v59 }
 0x263   :  { %1387 = vmatprep.subr.bf16.mxu1 %v1498_v16 }
 0x266   :  { %1388 = vmatpush3.bf16.msra.mxu1 %v1498_v16 }
 0x334   :  { %v1383_v15 = vpop.f32.mrb[4].mxu1 }
 0x335   :  { %v536_v17 = vadd.f32 %v1383_v15, %v1253_v14  ;;  %v527_v60 = vpop.f32.mrb[5].mxu1 }
 0x336   :  { %v528_v61 = vadd.f32 %v1253_v14, %v527_v60  ;;  %v1384_v62 = vpop.f32.mrb[6].mxu1 }
 0x337   :  { %v539_v63 = vadd.f32 %v1384_v62, %v1253_v14  ;;  %v530_v0 = vpop.f32.mrb[7].mxu1  ;;  %v544_v2 = vmax.f32 %v536_v17, 0.0 }
 0x338   :  { %v531_v1 = vadd.f32 %v1253_v14, %v530_v0  ;;  %v542_v4 = vmax.f32 %v528_v61, 0.0  ;;  %v1262_v61 = vld [vmem:[%s1951_s10] ss:$0 sm:$0xff] }
 0x339   :  { %v545_v3 = vmax.f32 %v539_v63, 0.0 }
 0x33a   :  { %v543_v5 = vmax.f32 %v531_v1, 0.0 }
 0x33b   :  { %v547_v6 = vpack.c.bf16 %v545_v3, %v544_v2  ;;  %v1263_v2 = vld [vmem:[%s1952_s11] ss:$0 sm:$0xff] }
 0x33c   :  { %v546_v7 = vpack.c.bf16 %v543_v5, %v542_v4 }
 0x33e   :  { %1389 = vmatprep.mubr.msk.bf16.mxu1 %vm303_vm6, %v546_v7 }
 0x33f   :  { %1390 = vmatmul.mubr.msk.bf16.vlgmr.msra.gmra.mrb[8].mxu1 %vm303_vm6, %v547_v6 }
 0x340   :  { %1423 = vmatprep.mubr.msk.bf16.mxu1 %vm409_vm4, %v1803_v10 }
 0x412   :  { %v1391_v9 = vpop.f32.mrb[8].mxu1 }
 0x413   :  { %v611_v11 = vpop.f32.mrb[9].mxu1  ;;  %v620_v12 = vadd.f32 %v1391_v9, %v1257_v8 }
 0x414   :  { %v612_v13 = vadd.f32 %v1257_v8, %v611_v11  ;;  %v1392_v18 = vpop.f32.mrb[10].mxu1 }
 0x415   :  { %v614_v19 = vpop.f32.mrb[11].mxu1  ;;  %v623_v21 = vadd.f32 %v1392_v18, %v1257_v8  ;;  %v641_v22 = vmul.f32 %v620_v12, %v620_v12  ;;  %v629_v27 = vsel %vm303_vm6, %v620_v12, 0.0 }
 0x416   :  { %v639_v20 = vmul.f32 %v612_v13, %v612_v13  ;;  %v615_v23 = vadd.f32 %v1257_v8, %v614_v19  ;;  %v626_v24 = vsel %vm303_vm6, %v612_v13, 0.0 }
 0x417   :  { %v642_v29 = vmul.f32 %v623_v21, %v623_v21  ;;  %v646_v33 = vsel %vm303_vm6, %v641_v22, 0.0  ;;  %v631_v34 = vsel %vm303_vm6, %v623_v21, 0.0 }
 0x418   :  { %v627_v25 = vsel %vm303_vm6, %v615_v23, 0.0  ;;  %v640_v26 = vmul.f32 %v615_v23, %v615_v23  ;;  %v643_v28 = vsel %vm303_vm6, %v639_v20, 0.0 }
 0x419   :  { %v628_v10 = vadd.f32 %v627_v25, %v626_v24  ;;  %v648_v37 = vsel %vm303_vm6, %v642_v29, 0.0 }
 0x41a   :  { %v644_v30 = vsel %vm303_vm6, %v640_v26, 0.0 }
 0x41b   :  { %v630_v31 = vadd.f32 %v629_v27, %v628_v10  ;;  %v645_v32 = vadd.f32 %v644_v30, %v643_v28 }
 0x41d   :  { %v632_v35 = vadd.f32 %v631_v34, %v630_v31  ;;  %v647_v36 = vadd.f32 %v646_v33, %v645_v32 }
 0x41f   :  { %v633_v38 = vrot.slane %v632_v35, 4  ;;  %v649_v39 = vadd.f32 %v648_v37, %v647_v36 }
 0x421   :  { %v634_v40 = vadd.f32 %v633_v38, %v632_v35  ;;  %v650_v41 = vrot.slane %v649_v39, 4 }
 0x423   :  { %v635_v43 = vrot.slane %v634_v40, 2  ;;  %v651_v44 = vadd.f32 %v650_v41, %v649_v39 }
 0x425   :  { %v636_v46 = vadd.f32 %v635_v43, %v634_v40  ;;  %v652_v47 = vrot.slane %v651_v44, 2 }
 0x427   :  { %v637_v49 = vrot.slane %v636_v46, 1  ;;  %v653_v50 = vadd.f32 %v652_v47, %v651_v44 }
 0x429   :  { %v638_v51 = vadd.f32 %v637_v49, %v636_v46  ;;  %v654_v52 = vrot.slane %v653_v50, 1 }
 0x42b   :  { %v655_v54 = vadd.f32 %v654_v52, %v653_v50  ;;  %v656_v55 = vmul.f32 0.03125, %v638_v51  ;;  %v1499_v50 = vld [vmem:[%s1955_s14] sm:$0xff]   ;;  %v1500_v51 = vld [vmem:[%s1955_s14 + $0x8] sm:$0xff]  }
 0x42d   :  { %v657_v56 = vmul.f32 0.03125, %v655_v54  ;;  %v658_v57 = vmul.f32 %v656_v55, %v656_v55  ;;  %v661_v58 = vsub.f32 %v615_v23, %v656_v55  ;;  %v660_v59 = vsub.f32 %v612_v13, %v656_v55  ;;  %v1264_v23 = vld [vmem:[%s1954_s13] ss:$0 sm:$0xff] }
 0x42e   :  { %v662_v16 = vsub.f32 %v620_v12, %v656_v55  ;;  %v663_v14 = vsub.f32 %v623_v21, %v656_v55 }
 0x42f   :  { %v659_v15 = vsub.f32 %v657_v56, %v658_v57 }
 0x431   :  { %v664_v17 = vadd.f32 1e-05, %v659_v15  ;;  %v1501_v15 = vld [vmem:[%s1957_s16] sm:$0xff]  }
 0x433   :  { %1505 = vrsqrt.f32 %v664_v17  ;;  %v1502_v17 = vld [vmem:[%s1957_s16 + $0x8] sm:$0xff]  }
 0x43d   :  { %v1506_v60 = vpop.eup %1505 }
 0x43e   :  { %v667_v62 = vmul.f32 %v1506_v60, %v661_v58  ;;  %v666_v63 = vmul.f32 %v1506_v60, %v660_v59  ;;  %v668_v0 = vmul.f32 %v1506_v60, %v662_v16  ;;  %v669_v1 = vmul.f32 %v1506_v60, %v663_v14  ;;  %v1275_v60 = vld [vmem:[%s1956_s15] ss:$0 sm:$0xff] }
 0x440   :  { %v677_v3 = vmul.f32 %v1262_v61, %v666_v63  ;;  %v678_v4 = vmul.f32 %v1262_v61, %v667_v62  ;;  %v679_v5 = vmul.f32 %v1262_v61, %v668_v0  ;;  %v680_v6 = vmul.f32 %v1262_v61, %v669_v1 }
 0x442   :  { %v1851_v7 = vadd.f32 %v1263_v2, %v677_v3  ;;  %v1853_v8 = vadd.f32 %v1263_v2, %v678_v4  ;;  %v1855_v9 = vadd.f32 %v1263_v2, %v679_v5  ;;  %v1857_v11 = vadd.f32 %v1263_v2, %v680_v6 }
 0x444   :  { %v692_v12 = vmax.f32 %v1851_v7, 0.0  ;;  %v693_v13 = vmax.f32 %v1853_v8, 0.0  ;;  %v694_v18 = vmax.f32 %v1855_v9, 0.0  ;;  %v695_v19 = vmax.f32 %v1857_v11, 0.0 }
 0x446   :  { %v696_v20 = vpack.c.bf16 %v693_v13, %v692_v12  ;;  %v697_v21 = vpack.c.bf16 %v695_v19, %v694_v18 }
 0x448   :  { %1403 = vmatprep.subr.bf16.mxu0 %v696_v20 }
 0x449   :  { %1404 = vmatpush3.bf16.msra.mxu0 %v696_v20 }
 0x44a   :  { %1405 = vmatprep.subr.bf16.mxu0 %v697_v21 }
 0x44d   :  { %1406 = vmatpush3.bf16.msra.mxu0 %v697_v21 }
 0x450   :  { %1408 = vmatmul.mubr.msk.bf16.vlgmr.msra.gmra.mrb[8].mxu0 %vm303_vm6, %v1769_v42 }
 0x451   :  { %1411 = vmatprep.mubr.msk.bf16.mxu0 %vm303_vm6, %v1776_v48 }
 0x458   :  { %1412 = vmatmul.mubr.msk.bf16.gmra.mrb[12].mxu0 %vm303_vm6, %v1782_v53 }
 0x523   :  { %v1409_v22 = vpop.f32.mrb[8].mxu0 }
 0x524   :  { %v1459_v24 = vadd.f32 %v1409_v22, %v1264_v23  ;;  %v808_v25 = vpop.f32.mrb[9].mxu0 }
 0x525   :  { %v1460_v26 = vadd.f32 %v1264_v23, %v808_v25  ;;  %v1410_v10 = vpop.f32.mrb[10].mxu0 }
 0x526   :  { %v1461_v27 = vadd.f32 %v1410_v10, %v1264_v23  ;;  %v811_v28 = vpop.f32.mrb[11].mxu0  ;;  %v841_v30 = vmax.f32 %v1459_v24, 0.0 }
 0x527   :  { %v1462_v29 = vadd.f32 %v1264_v23, %v811_v28  ;;  %v839_v31 = vmax.f32 %v1460_v26, 0.0 }
 0x528   :  { %v842_v42 = vmax.f32 %v1461_v27, 0.0 }
 0x529   :  { %v840_v32 = vmax.f32 %v1462_v29, 0.0 }
 0x52a   :  { %v848_v48 = vpack.c.bf16 %v842_v42, %v841_v30 }
 0x52b   :  { %v847_v33 = vpack.c.bf16 %v840_v32, %v839_v31  ;;  %v1413_v34 = vpop.f32.mrb[12].mxu0 }
 0x52c   :  { %v1463_v53 = vadd.f32 %v1413_v34, %v1264_v23  ;;  %v824_v35 = vpop.f32.mrb[13].mxu0 }
 0x52d   :  { %v1464_v36 = vadd.f32 %v1264_v23, %v824_v35  ;;  %v1414_v37 = vpop.f32.mrb[14].mxu0  ;;  %1415 = vmatprep.subr.bf16.mxu1 %v847_v33 }
 0x52e   :  { %v1465_v38 = vadd.f32 %v1414_v37, %v1264_v23  ;;  %v827_v39 = vpop.f32.mrb[15].mxu0  ;;  %1416 = vmatpush3.bf16.msra.mxu1 %v847_v33  ;;  %v845_v41 = vmax.f32 %v1463_v53, 0.0 }
 0x52f   :  { %v1466_v40 = vadd.f32 %v1264_v23, %v827_v39  ;;  %1417 = vmatprep.subr.bf16.mxu1 %v848_v48  ;;  %v843_v44 = vmax.f32 %v1464_v36, 0.0 }
 0x530   :  { %v846_v43 = vmax.f32 %v1465_v38, 0.0 }
 0x531   :  { %v844_v46 = vmax.f32 %v1466_v40, 0.0 }
 0x532   :  { %v850_v47 = vpack.c.bf16 %v846_v43, %v845_v41  ;;  %1418 = vmatpush3.bf16.msra.mxu1 %v848_v48 }
 0x533   :  { %v849_v49 = vpack.c.bf16 %v844_v46, %v843_v44 }
 0x535   :  { %1419 = vmatprep.subr.bf16.mxu1 %v849_v49 }
 0x536   :  { %1420 = vmatpush3.bf16.msra.mxu1 %v849_v49 }
 0x537   :  { %1421 = vmatprep.subr.bf16.mxu1 %v850_v47 }
 0x53a   :  { %1422 = vmatpush3.bf16.msra.mxu1 %v850_v47 }
 0x53b   :  { %1427 = vmatprep.subr.bf16.mxu1 %v1499_v50 }
 0x53d   :  { %1424 = vmatmul.mubr.msk.bf16.vlgmr.msra.gmra.mrb[12].mxu1 %vm409_vm4, %v1810_v45 }
 0x53e   :  { %1428 = vmatpush3.bf16.msra.mxu1 %v1499_v50 }
 0x53f   :  { %1429 = vmatprep.subr.bf16.mxu1 %v1500_v51 }
 0x542   :  { %1430 = vmatpush3.bf16.msra.mxu1 %v1500_v51 }
 0x543   :  { %1435 = vmatprep.subr.bf16.mxu1 %v1501_v15 }
 0x610   :  { %v1425_v52 = vpop.f32.mrb[12].mxu1 }
 0x611   :  { %v885_v54 = vpop.f32.mrb[13].mxu1  ;;  %v902_v56 = vadd.f32 %v1425_v52, %v694_v18  ;;  %v1280_v18 = vld [vmem:[%s1958_s17] ss:$0 sm:$0xff] }
 0x612   :  { %v1426_v55 = vpop.f32.mrb[14].mxu1  ;;  %v900_v45 = vadd.f32 %v885_v54, %v692_v12  ;;  %v1503_v12 = vld [vmem:[%s1961_s20] sm:$0xff]  }
 0x613   :  { %v903_v57 = vadd.f32 %v1426_v55, %v695_v19  ;;  %v888_v58 = vpop.f32.mrb[15].mxu1  ;;  %1443 = vmatprep.subr.bf16.mxu0 %v1503_v12 }
 0x614   :  { %v901_v59 = vadd.f32 %v888_v58, %v693_v13  ;;  %v1504_v13 = vld [vmem:[%s1961_s20 + $0x8] sm:$0xff]   ;;  %1444 = vmatpush3.bf16.msra.mxu0 %v1503_v12 }
 0x615   :  { %v905_v16 = vpack.c.bf16 %v903_v57, %v902_v56  ;;  %1445 = vmatprep.subr.bf16.mxu0 %v1504_v13 }
 0x616   :  { %v904_v14 = vpack.c.bf16 %v901_v59, %v900_v45 }
 0x618   :  { %1431 = vmatprep.mubr.msk.bf16.mxu1 %vm303_vm6, %v904_v14  ;;  %1446 = vmatpush3.bf16.msra.mxu0 %v1504_v13 }
 0x619   :  { %1432 = vmatmul.mubr.msk.bf16.vlgmr.msra.gmra.mrb[16].mxu1 %vm303_vm6, %v905_v16 }
 0x61a   :  { %1436 = vmatpush3.bf16.msra.mxu1 %v1501_v15 }
 0x61b   :  { %1437 = vmatprep.subr.bf16.mxu1 %v1502_v17 }
 0x61e   :  { %1438 = vmatpush3.bf16.msra.mxu1 %v1502_v17 }
 0x6ec   :  { %v1433_v61 = vpop.f32.mrb[16].mxu1 }
 0x6ed   :  { %v978_v62 = vadd.f32 %v1433_v61, %v1275_v60  ;;  %v969_v63 = vpop.f32.mrb[17].mxu1 }
 0x6ee   :  { %v970_v0 = vadd.f32 %v1275_v60, %v969_v63  ;;  %v1434_v1 = vpop.f32.mrb[18].mxu1 }
 0x6ef   :  { %v981_v2 = vadd.f32 %v1434_v1, %v1275_v60  ;;  %v972_v3 = vpop.f32.mrb[19].mxu1  ;;  %v986_v5 = vmax.f32 %v978_v62, 0.0  ;;  %v1285_v62 = vld [vmem:[%s1959_s18] ss:$0 sm:$0xff] }
 0x6f0   :  { %v973_v4 = vadd.f32 %v1275_v60, %v972_v3  ;;  %v984_v7 = vmax.f32 %v970_v0, 0.0  ;;  %v1286_v3 = vld [vmem:[%s1960_s19] ss:$0 sm:$0xff] }
 0x6f1   :  { %v987_v6 = vmax.f32 %v981_v2, 0.0 }
 0x6f2   :  { %v985_v8 = vmax.f32 %v973_v4, 0.0 }
 0x6f3   :  { %v989_v9 = vpack.c.bf16 %v987_v6, %v986_v5 }
 0x6f4   :  { %v988_v11 = vpack.c.bf16 %v985_v8, %v984_v7 }
 0x6f6   :  { %1439 = vmatprep.mubr.msk.bf16.mxu1 %vm303_vm6, %v988_v11 }
 0x6f7   :  { %1440 = vmatmul.mubr.msk.bf16.vlgmr.msra.gmra.mrb[20].mxu1 %vm303_vm6, %v989_v9 }
 0x7ca   :  { %v1441_v19 = vpop.f32.mrb[20].mxu1 }
 0x7cb   :  { %v1053_v20 = vpop.f32.mrb[21].mxu1  ;;  %v1062_v21 = vadd.f32 %v1441_v19, %v1280_v18 }
 0x7cc   :  { %v1054_v23 = vadd.f32 %v1280_v18, %v1053_v20  ;;  %v1442_v22 = vpop.f32.mrb[22].mxu1 }
 0x7cd   :  { %v1056_v24 = vpop.f32.mrb[23].mxu1  ;;  %v1065_v26 = vadd.f32 %v1442_v22, %v1280_v18  ;;  %v1083_v27 = vmul.f32 %v1062_v21, %v1062_v21  ;;  %v1071_v31 = vsel %vm303_vm6, %v1062_v21, 0.0  ;;  %v1287_v22 = vld [vmem:[%s1962_s21] ss:$0 sm:$0xff] }
 0x7ce   :  { %v1081_v25 = vmul.f32 %v1054_v23, %v1054_v23  ;;  %v1057_v10 = vadd.f32 %v1280_v18, %v1056_v24  ;;  %v1068_v28 = vsel %vm303_vm6, %v1054_v23, 0.0 }
 0x7cf   :  { %v1084_v48 = vmul.f32 %v1065_v26, %v1065_v26  ;;  %v1088_v35 = vsel %vm303_vm6, %v1083_v27, 0.0  ;;  %v1073_v36 = vsel %vm303_vm6, %v1065_v26, 0.0 }
 0x7d0   :  { %v1069_v29 = vsel %vm303_vm6, %v1057_v10, 0.0  ;;  %v1082_v30 = vmul.f32 %v1057_v10, %v1057_v10  ;;  %v1085_v32 = vsel %vm303_vm6, %v1081_v25, 0.0 }
 0x7d1   :  { %v1070_v42 = vadd.f32 %v1069_v29, %v1068_v28  ;;  %v1090_v39 = vsel %vm303_vm6, %v1084_v48, 0.0 }
 0x7d2   :  { %v1086_v33 = vsel %vm303_vm6, %v1082_v30, 0.0 }
 0x7d3   :  { %v1072_v34 = vadd.f32 %v1071_v31, %v1070_v42  ;;  %v1087_v53 = vadd.f32 %v1086_v33, %v1085_v32 }
 0x7d5   :  { %v1074_v37 = vadd.f32 %v1073_v36, %v1072_v34  ;;  %v1089_v38 = vadd.f32 %v1088_v35, %v1087_v53 }
 0x7d7   :  { %v1075_v40 = vrot.slane %v1074_v37, 4  ;;  %v1091_v41 = vadd.f32 %v1090_v39, %v1089_v38 }
 0x7d9   :  { %v1076_v43 = vadd.f32 %v1075_v40, %v1074_v37  ;;  %v1092_v44 = vrot.slane %v1091_v41, 4 }
 0x7db   :  { %v1077_v46 = vrot.slane %v1076_v43, 2  ;;  %v1093_v47 = vadd.f32 %v1092_v44, %v1091_v41 }
 0x7dd   :  { %v1078_v49 = vadd.f32 %v1077_v46, %v1076_v43  ;;  %v1094_v50 = vrot.slane %v1093_v47, 2 }
 0x7df   :  { %v1079_v51 = vrot.slane %v1078_v49, 1  ;;  %v1095_v52 = vadd.f32 %v1094_v50, %v1093_v47 }
 0x7e1   :  { %v1080_v54 = vadd.f32 %v1079_v51, %v1078_v49  ;;  %v1096_v55 = vrot.slane %v1095_v52, 1 }
 0x7e3   :  { %v1097_v56 = vadd.f32 %v1096_v55, %v1095_v52  ;;  %v1098_v57 = vmul.f32 0.03125, %v1080_v54 }
 0x7e5   :  { %v1099_v58 = vmul.f32 0.03125, %v1097_v56  ;;  %v1100_v45 = vmul.f32 %v1098_v57, %v1098_v57  ;;  %v1103_v59 = vsub.f32 %v1057_v10, %v1098_v57  ;;  %v1104_v16 = vsub.f32 %v1062_v21, %v1098_v57 }
 0x7e6   :  { %v1105_v14 = vsub.f32 %v1065_v26, %v1098_v57  ;;  %v1102_v15 = vsub.f32 %v1054_v23, %v1098_v57 }
 0x7e7   :  { %v1101_v17 = vsub.f32 %v1099_v58, %v1100_v45 }
 0x7e9   :  { %v1106_v60 = vadd.f32 1e-05, %v1101_v17 }
 0x7eb   :  { %1507 = vrsqrt.f32 %v1106_v60 }
 0x7f5   :  { %v1508_v61 = vpop.eup %1507 }
 0x7f6   :  { %v1109_v63 = vmul.f32 %v1508_v61, %v1103_v59  ;;  %v1110_v0 = vmul.f32 %v1508_v61, %v1104_v16  ;;  %v1111_v1 = vmul.f32 %v1508_v61, %v1105_v14  ;;  %v1108_v2 = vmul.f32 %v1508_v61, %v1102_v15 }
 0x7f8   :  { %v1120_v4 = vmul.f32 %v1285_v62, %v1109_v63  ;;  %v1121_v5 = vmul.f32 %v1285_v62, %v1110_v0  ;;  %v1122_v6 = vmul.f32 %v1285_v62, %v1111_v1  ;;  %v1119_v7 = vmul.f32 %v1285_v62, %v1108_v2 }
 0x7fa   :  { %v1130_v8 = vadd.f32 %v1286_v3, %v1119_v7  ;;  %v1131_v9 = vadd.f32 %v1286_v3, %v1120_v4  ;;  %v1132_v11 = vadd.f32 %v1286_v3, %v1121_v5  ;;  %v1133_v12 = vadd.f32 %v1286_v3, %v1122_v6 }
 0x7fc   :  { %v1134_v13 = vmax.f32 %v1130_v8, 0.0  ;;  %v1135_v18 = vmax.f32 %v1131_v9, 0.0  ;;  %v1136_v19 = vmax.f32 %v1132_v11, 0.0  ;;  %v1137_v20 = vmax.f32 %v1133_v12, 0.0 }
 0x7fe   :  { %v1138_v21 = vpack.c.bf16 %v1135_v18, %v1134_v13  ;;  %v1139_v23 = vpack.c.bf16 %v1137_v20, %v1136_v19 }
 0x800   :  { %1447 = vmatprep.mubr.msk.bf16.mxu0 %vm303_vm6, %v1138_v21 }
 0x801   :  { %1448 = vmatmul.mubr.msk.bf16.vlgmr.msra.gmra.mrb[16].mxu0 %vm303_vm6, %v1139_v23 }
 0x8d4   :  { %v1449_v24 = vpop.f32.mrb[16].mxu0 }
 0x8d5   :  { %v1212_v25 = vadd.f32 %v1449_v24, %v1287_v22  ;;  %v1203_v26 = vpop.f32.mrb[17].mxu0 }
 0x8d6   :  { %v1204_v10 = vadd.f32 %v1287_v22, %v1203_v26  ;;  %v1450_v27 = vpop.f32.mrb[18].mxu0 }
 0x8d7   :  { %1220 = vst [vmem:[#allocation2 + $0x10] sm:$0xff] %v1212_v25  ;;  %v1215_v28 = vadd.f32 %v1450_v27, %v1287_v22  ;;  %v1206_v29 = vpop.f32.mrb[19].mxu0 }
 0x8d8   :  { %1218 = vst [vmem:[#allocation2] sm:$0xff] %v1204_v10  ;;  %v1207_v30 = vadd.f32 %v1287_v22, %v1206_v29 }
 0x8d9   :  { %1221 = vst [vmem:[#allocation2 + $0x18] sm:$0xff] %v1215_v28 }
 0x8da   :  { %1219 = vst [vmem:[#allocation2 + $0x8] sm:$0xff] %v1207_v30 }
 0x8db   :  { %1520 = shalt.err (!%p1517_p4)
}
 0x8dc   :  { %s1521_s2 = scalar_lea.hbm %s1963_s22, 512 }
 0x8dd   :  { %p1522_p5 = scmp.ne.s32.totalorder %s1963_s22, %s1521_s2  ;;  %p1525_p6 = scmp.lt.u32.totalorder %s1521_s2, %s1963_s22 }
 0x8df   :  { %p1527_p7 = pnand %p1525_p6, %p1522_p5 }
 0x8e1   :  { %1530 = shalt.err (!%p1527_p7)
}
 0x8e2   :  { %s1536_s6 = smov 128   ;;  %s1537_s27 = smov 8  }
 0x8e3   :  { %1233 = dma.vmem_to_hbm [thread:$0]  %s1228_s9, 512, %s1963_s22, [#allocation3], %s1536_s6, %s1536_s6, %s1537_s27  }
 0x8e4   :  { %1531 = dma.done.wait [#allocation3], 512  }
 0x8e5   :  { %1532 = vsyncadd [#allocation3], 4294966784 }
 0x8e6   :  { %1237 = vsyncpa [#allocation3], 1 }

</bundles_post_ra>
